<compile_context>
chip_gen: v7x
topology: tpu7x:2x2x1
jax: 0.10.0
libtpu: 0.0.40
codegen_flags: <defaults>
</compile_context>

<pallas_src>
import functools
import math

import jax
import jax.numpy as jnp
from jax.experimental import pallas as pl
from jax.experimental.pallas import tpu as pltpu


def _round_up(n, m):
    return ((n + m - 1) // m) * m


def _token_embed_kernel(x_ref, w_ref, b_ref, o_ref):
    # x_ref: (TM, K)   windowed-im2col rows (K = (G+2)*C)
    # w_ref: (K, Dg)   banded tap weight    (Dg = G*D, multiple of 128)
    # b_ref: (1, Dg)   bias tiled across the G packed positions
    # o_ref: (TM, Dg)  lane-dense output tile (full-width vst, no vst.msk)
    acc = jnp.dot(x_ref[...], w_ref[...], preferred_element_type=jnp.float32)
    o_ref[...] = (acc + b_ref[...]).astype(o_ref.dtype)


@functools.partial(jax.jit, static_argnames=("row_tile", "out_dtype"))
def token_embedding(x, weight, bias, *, row_tile=4096, out_dtype=jnp.float32):
    """Circular Conv1d(k=3, pad=1) token embedding.

    x: (B, L, c_in) ; weight: (d_model, c_in, 3) ; bias: (d_model,)
    returns: (B, L, d_model) in `out_dtype`.
    """
    B, L, C = x.shape
    D = weight.shape[0]
    x = x.astype(jnp.float32)

    # --- row-group size: pack G consecutive sequence positions per output row so
    #     the store width G*D is always a multiple of 128 lanes (no masked stores).
    if D % 128 == 0:
        G = 1
    else:
        G = math.lcm(D, 128) // D
        # NOTE: for pathological d_model (e.g. 100) G can get large; it stays
        # correct, merely less MXU-efficient — still DMA-bound for small c_in.
    Dg = G * D
    win = G + 2                                   # padded positions feeding one packed row

    # --- circular pad (+ zero pad so L is a multiple of G): ~N*C extra traffic only.
    Lp = _round_up(L, G)
    x_pad = jnp.concatenate(
        [x[:, L - 1:L, :], x, x[:, 0:1, :],
         jnp.zeros((B, Lp - L, C), jnp.float32)], axis=1)            # (B, Lp+2, C)

    # --- windowed im2col: row (b, t) holds padded positions [t*G, t*G + G + 2).
    T = Lp // G
    idx = jnp.arange(T)[:, None] * G + jnp.arange(win)[None, :]      # (T, win)
    xw = x_pad[:, idx, :].reshape(B * T, win * C)                    # (B*T, K)
    K = win * C
    n_rows = B * T

    # --- banded block weight: Wbig[j*C:(j+1)*C, g*D:(g+1)*D] = tap (j-g) for
    #     0 <= j-g <= 2.  Tap 0 sees x[l-1], tap 1 x[l], tap 2 x[l+1] (PyTorch
    #     cross-correlation with circular pad=1).
    w_taps = jnp.transpose(weight, (2, 1, 0)).astype(jnp.float32)    # (3, C, D)
    wbig = jnp.zeros((K, Dg), jnp.float32)
    for g in range(G):
        for k in range(3):
            j = g + k
            wbig = wbig.at[j * C:(j + 1) * C, g * D:(g + 1) * D].set(w_taps[k])
    bg = jnp.tile(bias.astype(jnp.float32), G).reshape(1, Dg)

    # --- tile selection: big row tiles (default 4096) so the pipeline is
    #     bandwidth- not overhead-bound; cap by a VMEM budget (double-buffered
    #     input + output tiles must fit well under the 32 MiB scoped limit on all
    #     of v5e/v6e/v7x); ensure >=2 grid steps when there is enough work so the
    #     "parallel" axis shards across v7x's two TensorCores.
    out_itemsize = jnp.dtype(out_dtype).itemsize
    vmem_budget = 24 * 1024 * 1024
    per_row_bytes = 2 * (K * 4 + Dg * out_itemsize)                  # 2x = double buffer
    tm_vmem = max(8, (vmem_budget // per_row_bytes) // 8 * 8)
    tm_cap = min(row_tile, tm_vmem)

    tm_full = _round_up(n_rows, 8)
    n_steps = max(1, -(-tm_full // tm_cap))
    if n_steps == 1 and n_rows >= 16:
        n_steps = 2                                                  # megacore split
    tm = _round_up(-(-n_rows // n_steps), 8)
    NG = _round_up(n_rows, tm)

    if NG > n_rows:
        xw = jnp.pad(xw, ((0, NG - n_rows), (0, 0)))

    out = pl.pallas_call(
        _token_embed_kernel,
        out_shape=jax.ShapeDtypeStruct((NG, Dg), out_dtype),
        grid_spec=pltpu.PrefetchScalarGridSpec(
            num_scalar_prefetch=0,
            grid=(NG // tm,),
            in_specs=[
                pl.BlockSpec((tm, K), lambda i: (i, 0)),
                pl.BlockSpec((K, Dg), lambda i: (0, 0)),   # resident: fetched once
                pl.BlockSpec((1, Dg), lambda i: (0, 0)),   # resident: fetched once
            ],
            out_specs=pl.BlockSpec((tm, Dg), lambda i: (i, 0)),
        ),
        compiler_params=pltpu.CompilerParams(
            dimension_semantics=("parallel",),
            vmem_limit_bytes=32 * 1024 * 1024,
        ),
    )(xw, wbig, bg)

    # (n_rows, G*D) is row-major identical to (B, Lp, D): unpacking is a free
    # reshape; drop the zero-padded tail positions.
    out = out[:n_rows].reshape(B, Lp, D)[:, :L, :]
    return out


def _reference(x, weight, bias):
    """Plain-JAX reference mirroring PyTorch's circular Conv1d forward."""
    x_pad = jnp.concatenate([x[:, -1:, :], x, x[:, :1, :]], axis=1)   # (B, L+2, C)
    w = jnp.transpose(weight, (2, 1, 0))                              # (3, C, D)
    L = x.shape[1]
    out = (jnp.einsum("blc,cd->bld", x_pad[:, 0:L], w[0]) +
           jnp.einsum("blc,cd->bld", x_pad[:, 1:L + 1], w[1]) +
           jnp.einsum("blc,cd->bld", x_pad[:, 2:L + 2], w[2]))
    return out + bias[None, None, :]


if __name__ == "__main__":
    B, L, C_IN, D_MODEL = 2, 8, 4, 32

    key = jax.random.PRNGKey(0)
    k_x, k_w, k_b = jax.random.split(key, 3)

    # Deterministic parameter init mirroring nn.Conv1d + kaiming_normal_(fan_in, leaky_relu).
    fan_in = C_IN * 3
    gain = (2.0 / (1.0 + 0.01 ** 2)) ** 0.5
    w_std = gain / (fan_in ** 0.5)
    weight = w_std * jax.random.normal(k_w, (D_MODEL, C_IN, 3), dtype=jnp.float32)
    b_bound = 1.0 / (fan_in ** 0.5)
    bias = jax.random.uniform(k_b, (D_MODEL,), dtype=jnp.float32,
                              minval=-b_bound, maxval=b_bound)

    x = jax.random.normal(k_x, (B, L, C_IN), dtype=jnp.float32)

    out = token_embedding(x, weight, bias)
    out = jax.block_until_ready(out)

    ref = _reference(x, weight, bias)
    assert out.shape == (B, L, D_MODEL)
    assert jnp.allclose(out, ref, atol=1e-4, rtol=1e-4)

    print("KERNEL_OK")
</pallas_src>

<mosaic_0001>
module attributes {stable_mosaic.version = 11 : i64} {
  func.func @_token_embed_kernel(%arg0: i32, %arg1: memref<8x24xf32, #tpu.memory_space<vmem>>, %arg2: memref<24x128xf32, #tpu.memory_space<vmem>>, %arg3: memref<1x128xf32, #tpu.memory_space<vmem>>, %arg4: memref<8x128xf32, #tpu.memory_space<vmem>>) attributes {dimension_semantics = [#tpu.dimension_semantics<parallel>], iteration_bounds = array<i64: 1>, scalar_prefetch = 0 : i64, scratch_operands = 0 : i64, tpu.core_type = #tpu.core_type<tc>, window_params = [{transform_indices = @transform_0, window_bounds = array<i64: 8, 24>}, {pipeline_mode = #tpu.pipeline_mode<synchronous>, transform_indices = @transform_1, window_bounds = array<i64: 24, 128>}, {pipeline_mode = #tpu.pipeline_mode<synchronous>, transform_indices = @transform_2, window_bounds = array<i64: 1, 128>}, {transform_indices = @transform_3, window_bounds = array<i64: 8, 128>}]} {
    %c0 = arith.constant 0 : index
    %c0_0 = arith.constant 0 : index
    %0 = vector.load %arg1[%c0, %c0_0] : memref<8x24xf32, #tpu.memory_space<vmem>>, vector<8x24xf32>
    %c0_1 = arith.constant 0 : index
    %c0_2 = arith.constant 0 : index
    %1 = vector.load %arg2[%c0_1, %c0_2] : memref<24x128xf32, #tpu.memory_space<vmem>>, vector<24x128xf32>
    %cst = arith.constant dense<0.000000e+00> : vector<8x128xf32>
    %2 = tpu.matmul %0, %1, %cst {dimension_numbers = #tpu.dot_dimension_numbers<[1], [0], [0], [1], [0, 0, 1, 1], [], []>} : vector<8x24xf32>, vector<24x128xf32>, vector<8x128xf32> -> vector<8x128xf32>
    %c0_3 = arith.constant 0 : index
    %c0_4 = arith.constant 0 : index
    %3 = vector.load %arg3[%c0_3, %c0_4] : memref<1x128xf32, #tpu.memory_space<vmem>>, vector<1x128xf32>
    %4 = vector.broadcast %3 : vector<1x128xf32> to vector<8x128xf32>
    %5 = arith.addf %2, %4 : vector<8x128xf32>
    %c0_5 = arith.constant 0 : index
    %c0_6 = arith.constant 0 : index
    %6 = vector.load %arg4[%c0_5, %c0_6] : memref<8x128xf32, #tpu.memory_space<vmem>>, vector<8x128xf32>
    tpu.vector_store %arg4[%c0_5, %c0_6], %5 {strides = array<i32>} : memref<8x128xf32, #tpu.memory_space<vmem>>, vector<8x128xf32>,
    return
  }
  func.func @transform_0(%arg0: i32) -> (i32, i32) {
    %c0_i32 = arith.constant 0 : i32
    %c0_i32_0 = arith.constant 0 : i32
    return %arg0, %c0_i32 : i32, i32
  }
  func.func @transform_1(%arg0: i32) -> (i32, i32) {
    %c0_i32 = arith.constant 0 : i32
    %c0_i32_0 = arith.constant 0 : i32
    %c0_i32_1 = arith.constant 0 : i32
    return %c0_i32, %c0_i32_0 : i32, i32
  }
  func.func @transform_2(%arg0: i32) -> (i32, i32) {
    %c0_i32 = arith.constant 0 : i32
    %c0_i32_0 = arith.constant 0 : i32
    %c0_i32_1 = arith.constant 0 : i32
    return %c0_i32, %c0_i32_0 : i32, i32
  }
  func.func @transform_3(%arg0: i32) -> (i32, i32) {
    %c0_i32 = arith.constant 0 : i32
    %c0_i32_0 = arith.constant 0 : i32
    return %arg0, %c0_i32 : i32, i32
  }
}

</mosaic_0001>

<bundles_post_ra>
// kernel: tile.8
= control target key start
LH: loop header
LB: loop body
LE: loop exit
PB: predicated region body
PF: predicated region fallthrough
CT: control target
= control target key end

     0   :  { %s22_s0 = inlined_call_operand.vmem [shape: f32[32], index: 0, kind: input, shape index: {}]   ;;  %s23_s1 = inlined_call_operand.vmem [shape: f32[4,32], index: 1, kind: output, shape index: {}]  }
   0x1   :  { %v4_v0 = vld [vmem:[%s22_s0] ss:$0 sm:$0xff] }
   0x2   :  { %5 = vst [vmem:[%s23_s1] sm:$0xf] %v4_v0 }

// kernel: tile.9
= control target key start
LH: loop header
LB: loop body
LE: loop exit
PB: predicated region body
PF: predicated region fallthrough
CT: control target
= control target key end

     0   :  { %vm7_vm0 = vcmask 261120   ;;  %s37_s8 = smov 32   ;;  %s38_s9 = smov 64   ;;  %vm13_vm1 = vcmask 1048320   ;;  %vm19_vm2 = vcmask 785920   ;;  %vm25_vm3 = vcmask 523520   ;;  %s55_s0 = inlined_call_operand.vmem [shape: f32[4,32], index: 0, kind: input, shape index: {}]   ;;  %s56_s1 = inlined_call_operand.vmem [shape: f32[1,128], index: 1, kind: output, shape index: {}]  }
   0x1   :  { %v4_v0 = vld [vmem:[%s55_s0] sm:$0xf]  ;;  %s36_s0 = smov 96  }
   0x2   :  { %5 = vst [vmem:[#allocation1] sm:$0xf] %v4_v0 }
   0x9   :  { %v10_v1 = vld [vmem:[#allocation1 + $0x3] sm:$0x1]   ;;  %v22_v2 = vld [vmem:[#allocation1 + $0x1] sm:$0x1]   ;;  %v6_v3 = vld [vmem:[#allocation1] sm:$0x1]  }
   0xa   :  { %11 = vrot.lane.b32.xlu0 %v10_v1, %s36_s0  ;;  %23 = vrot.lane.b32.xlu1 %v22_v2, %s37_s8  ;;  %v16_v4 = vld [vmem:[#allocation1 + $0x2] sm:$0x1]   ;;  %8 = vst.msk [vmem:[#allocation0] sm:$0x1] %vm7_vm0, %v6_v3  }
   0xe   :  { %17 = vrot.lane.b32.xlu0 %v16_v4, %s38_s9 }
  0x7c   :  { %v12_v5 = vpop.permute.xlu0 %11   ;;  %v24_v6 = vpop.permute.xlu1 %23  }
  0x7d   :  { %14 = vst.msk [vmem:[#allocation0] sm:$0x1] %vm13_vm1, %v12_v5  }
  0x80   :  { %v18_v7 = vpop.permute.xlu0 %17  }
  0x81   :  { %20 = vst.msk [vmem:[#allocation0] sm:$0x1] %vm19_vm2, %v18_v7  }
  0x82   :  { %26 = vst.msk [vmem:[#allocation0] sm:$0x1] %vm25_vm3, %v24_v6  }
  0x89   :  { %v30_v8 = vld [vmem:[#allocation0] sm:$0x1] }
  0x8a   :  { %32 = vst [vmem:[%s56_s1] sm:$0x1] %v30_v8 }

// kernel: token_embedding.1
= control target key start
LH: loop header
LB: loop body
LE: loop exit
PB: predicated region body
PF: predicated region fallthrough
CT: control target
= control target key end

     0   :  { %v125_v0 = vmov 0.0|0.0   ;;  %vm126_vm0 = vmmov 0   ;;  %v127_v3 = vmov 0.0   ;;  %vm25_vm1 = vcmask 195584   ;;  %s166_s1 = inlined_call_operand.vmem [shape: f32[24,128], index: 1, kind: input, shape index: {}]   ;;  %s167_s0 = inlined_call_operand.vmem [shape: f32[8,24], index: 0, kind: input, shape index: {}]   ;;  %s168_s2 = inlined_call_operand.vmem [shape: f32[1,128], index: 2, kind: input, shape index: {}]   ;;  %s169_s3 = inlined_call_operand.vmem [shape: f32[8,128], index: 3, kind: output, shape index: {}]  }
   0x1   :  { %119 = vmatprep.subr.bf16.mxu0 %v125_v0  ;;  %v15_v1 = vld [vmem:[%s166_s1] sm:$0xff]  ;;  %v16_v2 = vld [vmem:[%s166_s1 + $0x8] sm:$0xff]  ;;  %116 = vmatprep.mubr.msk.f32.mxu0 %vm126_vm0, %v127_v3  ;;  %v17_v5 = vld [vmem:[%s166_s1 + $0x10] sm:$0xff] }
   0x2   :  { %v120_v4 = vpack.c.bf16 %v16_v2, %v15_v1  ;;  %v14_v6 = vld [vmem:[%s167_s0] sm:$0xff] }
   0x3   :  { %v104_v7 = vld [vmem:[%s168_s2] ss:$0 sm:$0xff] }
   0x4   :  { %121 = vmatpush3.bf16.msra.mxu0 %v120_v4 }
   0x5   :  { %114 = vmatprep.subr.mxu0 %v127_v3 }
   0x8   :  { %115 = vmatpush3.msra.mxu0 %v17_v5 }
   0x9   :  { %117 = vmatmul.mubr.msk.f32.vlgmr.msra.gmra.mrb[0].mxu0 %vm25_vm1, %v14_v6 }
  0xdc   :  { %v95_v8 = vpop.f32.mrb[0].mxu0 }
  0xdd   :  { %v96_v9 = vadd.f32 %v104_v7, %v95_v8  ;;  %v118_v10 = vpop.f32.mrb[1].mxu0 }
  0xdf   :  { %99 = vst [vmem:[%s169_s3] sm:$0xff] %v96_v9 }

</bundles_post_ra>
